<compile_context>
chip_gen: v7x
topology: tpu7x:2x2x1
jax: 0.10.0
libtpu: 0.0.40
codegen_flags: <defaults>
</compile_context>

<pallas_src>
import functools

import jax
import jax.numpy as jnp
from jax.experimental import pallas as pl
from jax.experimental.pallas import tpu as pltpu

_LANE = 128
_SUBLANE = 8
_MAX_TM = 512                       # upper bound on the M tile
_VMEM_LIMIT = 32 * 1024 * 1024      # explicit scoped-VMEM limit (safe on v5e/v6e/v7x)
_VMEM_BUDGET = 24 * 1024 * 1024     # planning budget (headroom under the limit)


def _round_up(v: int, m: int) -> int:
    return (v + m - 1) // m * m


# ----------------------------------------------------------------------------
# One fused Pallas kernel for every "interpreter graph".
# Grid = (num_calls, grid_m); both axes "parallel" (disjoint output blocks).
#   act_ref : scalar-prefetch SMEM ref, int32[num_calls] (0=id, 1=relu, 2=tanh)
#   x_ref   : (tm, K)       f32   (cast to bf16 in-kernel for the MXU)
#   w_ref   : (K, N_pad)    bf16  (shared, grid-constant -> VMEM resident)
#   b_ref   : (1, N_pad)    f32   (shared, grid-constant)
#   o_ref   : (tm, N_pad)   out_dtype   (calls dim squeezed out via None block)
# ----------------------------------------------------------------------------
def _fused_linear_act_kernel(act_ref, x_ref, w_ref, b_ref, o_ref):
    a = act_ref[pl.program_id(0)]
    x = x_ref[...].astype(jnp.bfloat16)
    y = jnp.dot(x, w_ref[...], preferred_element_type=jnp.float32)
    y = y + b_ref[...]  # (tm, N_pad) + (1, N_pad) broadcast, f32 epilogue

    @pl.when(a == 1)
    def _():
        o_ref[...] = jnp.maximum(y, 0.0).astype(o_ref.dtype)

    @pl.when(a == 2)
    def _():
        o_ref[...] = jnp.tanh(y).astype(o_ref.dtype)

    @pl.when(jnp.logical_and(a != 1, a != 2))
    def _():
        o_ref[...] = y.astype(o_ref.dtype)


def _tm_budget_cap(K: int, N_pad: int, out_itemsize: int) -> int:
    """Largest sublane-aligned M tile that fits the VMEM plan (double-buffered
    x/out tiles + resident double-buffered w/b)."""
    resident = 2 * (K * N_pad * 2) + 2 * (N_pad * 4)          # w bf16 + b f32
    per_row = 2 * (K * 4) + 2 * (N_pad * out_itemsize)        # x f32 + out
    cap = max(_SUBLANE, (_VMEM_BUDGET - resident) // max(per_row, 1))
    return max(_SUBLANE, (cap // _SUBLANE) * _SUBLANE)


def _fused_forward(act_ids, x, w_p, b_p, *, n_out, out_dtype):
    """act_ids: int32[num_calls]; x: (M, K) f32; w_p: (K, N_pad) bf16;
    b_p: (1, N_pad) f32.  Returns (num_calls, M, n_out) or (M, n_out)."""
    num_calls = act_ids.shape[0]
    M, K = x.shape
    Kw, N_pad = w_p.shape
    assert Kw == K
    out_itemsize = jnp.dtype(out_dtype).itemsize

    # M tile: sublane-aligned, capped by the VMEM budget and by M itself.
    tm = min(_tm_budget_cap(K, N_pad, out_itemsize), _round_up(M, _SUBLANE), _MAX_TM)
    tm = max(_SUBLANE, (tm // _SUBLANE) * _SUBLANE)
    M_pad = _round_up(M, tm)
    grid_m = M_pad // tm

    # Only pad rows when needed (toy M=8 -> no wrapper op at all).
    x_in = x if M_pad == M else jnp.pad(x, ((0, M_pad - M), (0, 0)))

    cost = pl.CostEstimate(
        flops=2 * num_calls * M_pad * K * N_pad,
        transcendentals=num_calls * M_pad * N_pad,  # worst case (tanh graph)
        bytes_accessed=(num_calls * M_pad * K * 4 + K * N_pad * 2 + N_pad * 4
                        + num_calls * M_pad * N_pad * out_itemsize),
    )

    out = pl.pallas_call(
        _fused_linear_act_kernel,
        out_shape=jax.ShapeDtypeStruct((num_calls, M_pad, N_pad), out_dtype),
        grid_spec=pltpu.PrefetchScalarGridSpec(
            num_scalar_prefetch=1,
            grid=(num_calls, grid_m),
            in_specs=[
                pl.BlockSpec((tm, K), lambda c, i, acts: (i, 0)),
                pl.BlockSpec((K, N_pad), lambda c, i, acts: (0, 0)),
                pl.BlockSpec((1, N_pad), lambda c, i, acts: (0, 0)),
            ],
            out_specs=pl.BlockSpec((None, tm, N_pad), lambda c, i, acts: (c, i, 0)),
        ),
        compiler_params=pltpu.CompilerParams(
            dimension_semantics=("parallel", "parallel"),
            vmem_limit_bytes=_VMEM_LIMIT,
        ),
        cost_estimate=cost,
    )(act_ids, x_in, w_p, b_p)

    # Strip padding only if any was added (layout plumbing, fused into the jit).
    if M_pad != M or N_pad != n_out:
        out = out[:, :M, :n_out]
    if num_calls == 1:
        out = out[0]
    return out


# ----------------------------------------------------------------------------
# Shared parameters + the single compiled executable used by every call module.
# ----------------------------------------------------------------------------
class SharedFusedLinear:
    def __init__(self, w, b, out_dtype=jnp.float32):
        K, N = w.shape
        # Lane-pad only the OUTPUT (N) dim, and only when it pays off; never pad
        # K (full-dim blocks bypass the 128-lane rule; K-padding is wasted DMA
        # and MXU work).  Padding is done ONCE here, shared by all graphs.
        N_pad = _round_up(N, _LANE) if N >= _LANE else N
        self.n_out = N
        self.w_p = jnp.pad(w, ((0, 0), (0, N_pad - N))).astype(jnp.bfloat16)
        self.b_p = jnp.pad(b.reshape(1, N), ((0, 0), (0, N_pad - N))).astype(jnp.float32)
        self._fwd = jax.jit(
            functools.partial(_fused_forward, n_out=N, out_dtype=out_dtype))

    def __call__(self, act_ids, x):
        return self._fwd(act_ids, x, self.w_p, self.b_p)


class InterpreterModule:
    """One recorded 'graph' of the submodule: the shared fused kernel plus a
    per-graph act id (traced argument -> no recompilation per graph)."""

    def __init__(self, shared: SharedFusedLinear, act_id: int, ty=None):
        self._shared = shared
        self.act_id = int(act_id)
        self._act_ids = jnp.asarray([act_id], dtype=jnp.int32)
        self._ty = ty

    def type_name(self):
        return self._ty

    def __call__(self, x):
        return self._shared(self._act_ids, x)


# ----------------------------------------------------------------------------
# The dispatcher itself (pure Python control flow, mirrors the torch module).
# ----------------------------------------------------------------------------
class InterpreterModuleDispatcher:
    """Each call dispatches to the next call-module and wraps back around."""

    def __init__(self, call_modules):
        assert call_modules
        self._call_modules = list(call_modules)
        self._ty = call_modules[0].type_name()
        self._num_calls = 0

    def forward(self, *args, **kwargs):
        call_module = self._call_modules[self._num_calls]
        self._num_calls = (self._num_calls + 1) % len(self._call_modules)
        try:
            return call_module(*args, **kwargs)
        except Exception:
            # TODO(synk): asynchronous device-side failures are not catchable
            # here under jit, so reset-on-exception only covers host errors.
            self._num_calls = 0
            raise

    __call__ = forward

    def forward_sequence(self, x, num_steps):
        """Fused fast path: dispatch `num_steps` consecutive calls (same input,
        wrap-around) in ONE pallas_call via a leading 'calls' grid axis and a
        scalar-prefetched act-id table.  Returns (list_of_outputs, module_order)."""
        n = len(self._call_modules)
        order = [(self._num_calls + s) % n for s in range(num_steps)]
        act_ids = jnp.asarray(
            [self._call_modules[i].act_id for i in order], dtype=jnp.int32)
        shared = self._call_modules[0]._shared  # params shared with module 0
        try:
            out = shared(act_ids, x)            # (num_steps, M, N)
        except Exception:
            self._num_calls = 0
            raise
        self._num_calls = (self._num_calls + num_steps) % n
        return [out[i] for i in range(num_steps)], order

    def call_modules(self):
        return self._call_modules

    def type_name(self):
        return self._ty


# ----------------------------------------------------------------------------
# Driver
# ----------------------------------------------------------------------------
if __name__ == "__main__":
    M, K, N = 8, 32, 32  # small shapes: seq=8, hidden=32

    key = jax.random.PRNGKey(0)
    kx, kw, kb = jax.random.split(key, 3)

    # Deterministic synthetic parameters, SHARED across all call modules.
    w = jax.random.normal(kw, (K, N), dtype=jnp.float32) * 0.1
    b = jax.random.normal(kb, (N,), dtype=jnp.float32) * 0.1
    x = jax.random.normal(kx, (M, K), dtype=jnp.float32)

    shared = SharedFusedLinear(w, b)
    # Three recorded "calls" of the submodule -> three interpreter graphs
    # (identity / relu / tanh epilogues), all backed by the SAME kernel.
    acts = [0, 1, 2]
    call_modules = [InterpreterModule(shared, a, ty="FusedLinearAct") for a in acts]
    dispatcher = InterpreterModuleDispatcher(call_modules)

    # Pure-JAX references for each graph.
    def ref(a, xx):
        y = xx @ w + b
        if a == 1:
            return jnp.maximum(y, 0.0)
        if a == 2:
            return jnp.tanh(y)
        return y

    # (1) Per-call dispatch exercising the wrap-around: calls hit graphs
    #     0,1,2 then wrap back to 0.  Async enqueue, single host sync.
    expected_order = acts + [acts[0]]
    outs = [dispatcher(x) for _ in expected_order]
    outs = jax.block_until_ready(outs)
    for i, (a, out) in enumerate(zip(expected_order, outs)):
        r = ref(a, x)
        assert out.shape == (M, N) and out.dtype == jnp.float32
        # bf16 matmul inputs (f32 accumulation) -> loose tolerance vs f32 ref.
        assert jnp.allclose(out, r, atol=2e-2, rtol=2e-2), f"per-call mismatch {i}"

    # (2) Fused sequence fast path: the next wrap-around sequence as ONE kernel.
    seq_outs, order = dispatcher.forward_sequence(x, num_steps=len(acts) + 1)
    seq_outs = jax.block_until_ready(seq_outs)
    for i, (mod_idx, out) in enumerate(zip(order, seq_outs)):
        a = acts[mod_idx]
        r = ref(a, x)
        assert out.shape == (M, N) and out.dtype == jnp.float32
        assert jnp.allclose(out, r, atol=2e-2, rtol=2e-2), f"sequence mismatch {i}"

    print("KERNEL_OK")
</pallas_src>

<mosaic_0001>
module attributes {stable_mosaic.version = 11 : i64} {
  func.func @_fused_linear_act_kernel(%arg0: i32, %arg1: i32, %arg2: memref<1xi32, #tpu.memory_space<smem>>, %arg3: memref<8x32xf32, #tpu.memory_space<vmem>>, %arg4: memref<32x32xbf16, #tpu.memory_space<vmem>>, %arg5: memref<1x32xf32, #tpu.memory_space<vmem>>, %arg6: memref<1x8x32xf32, #tpu.memory_space<vmem>>) attributes {dimension_semantics = [#tpu.dimension_semantics<parallel>, #tpu.dimension_semantics<parallel>], iteration_bounds = array<i64: 1, 1>, scalar_prefetch = 1 : i64, scratch_operands = 0 : i64, tpu.core_type = #tpu.core_type<tc>, window_params = [{transform_indices = @transform_0, window_bounds = array<i64: 8, 32>}, {pipeline_mode = #tpu.pipeline_mode<synchronous>, transform_indices = @transform_1, window_bounds = array<i64: 32, 32>}, {pipeline_mode = #tpu.pipeline_mode<synchronous>, transform_indices = @transform_2, window_bounds = array<i64: 1, 32>}, {transform_indices = @transform_3, window_bounds = array<i64: 1, 8, 32>}]} {
    %0 = arith.index_cast %arg0 : i32 to index
    %1 = memref.load %arg2[%0] : memref<1xi32, #tpu.memory_space<smem>>
    %c0 = arith.constant 0 : index
    %c0_0 = arith.constant 0 : index
    %2 = vector.load %arg3[%c0, %c0_0] : memref<8x32xf32, #tpu.memory_space<vmem>>, vector<8x32xf32>
    %3 = arith.truncf %2 : vector<8x32xf32> to vector<8x32xbf16>
    %c0_1 = arith.constant 0 : index
    %c0_2 = arith.constant 0 : index
    %4 = vector.load %arg4[%c0_1, %c0_2] : memref<32x32xbf16, #tpu.memory_space<vmem>>, vector<32x32xbf16>
    %cst = arith.constant dense<0.000000e+00> : vector<8x32xf32>
    %5 = tpu.matmul %3, %4, %cst {dimension_numbers = #tpu.dot_dimension_numbers<[1], [0], [0], [1], [0, 0, 1, 1], [], []>} : vector<8x32xbf16>, vector<32x32xbf16>, vector<8x32xf32> -> vector<8x32xf32>
    %c0_3 = arith.constant 0 : index
    %c0_4 = arith.constant 0 : index
    %6 = vector.load %arg5[%c0_3, %c0_4] : memref<1x32xf32, #tpu.memory_space<vmem>>, vector<1x32xf32>
    %7 = vector.broadcast %6 : vector<1x32xf32> to vector<8x32xf32>
    %8 = arith.addf %5, %7 : vector<8x32xf32>
    %c1_i32 = arith.constant 1 : i32
    %9 = arith.cmpi eq, %1, %c1_i32 : i32
    %10 = arith.extui %9 : i1 to i32
    %c0_i32 = arith.constant 0 : i32
    %11 = arith.cmpi ne, %10, %c0_i32 : i32
    scf.if %11 {
      %cst_9 = arith.constant 0.000000e+00 : f32
      %20 = vector.broadcast %cst_9 : f32 to vector<8x32xf32>
      %21 = arith.maximumf %8, %20 : vector<8x32xf32>
      %c0_10 = arith.constant 0 : index
      %c0_11 = arith.constant 0 : index
      %c0_12 = arith.constant 0 : index
      %22 = vector.load %arg6[%c0_10, %c0_11, %c0_12] : memref<1x8x32xf32, #tpu.memory_space<vmem>>, vector<1x8x32xf32>
      %23 = vector.shape_cast %22 : vector<1x8x32xf32> to vector<8x32xf32>
      %24 = vector.shape_cast %21 : vector<8x32xf32> to vector<1x8x32xf32>
      tpu.vector_store %arg6[%c0_10, %c0_11, %c0_12], %24 {strides = array<i32>} : memref<1x8x32xf32, #tpu.memory_space<vmem>>, vector<1x8x32xf32>,
    } else {
    }
    %c2_i32 = arith.constant 2 : i32
    %12 = arith.cmpi eq, %1, %c2_i32 : i32
    %13 = arith.extui %12 : i1 to i32
    %c0_i32_5 = arith.constant 0 : i32
    %14 = arith.cmpi ne, %13, %c0_i32_5 : i32
    scf.if %14 {
      %20 = math.tanh %8 : vector<8x32xf32>
      %c0_9 = arith.constant 0 : index
      %c0_10 = arith.constant 0 : index
      %c0_11 = arith.constant 0 : index
      %21 = vector.load %arg6[%c0_9, %c0_10, %c0_11] : memref<1x8x32xf32, #tpu.memory_space<vmem>>, vector<1x8x32xf32>
      %22 = vector.shape_cast %21 : vector<1x8x32xf32> to vector<8x32xf32>
      %23 = vector.shape_cast %20 : vector<8x32xf32> to vector<1x8x32xf32>
      tpu.vector_store %arg6[%c0_9, %c0_10, %c0_11], %23 {strides = array<i32>} : memref<1x8x32xf32, #tpu.memory_space<vmem>>, vector<1x8x32xf32>,
    } else {
    }
    %c1_i32_6 = arith.constant 1 : i32
    %15 = arith.cmpi ne, %1, %c1_i32_6 : i32
    %c2_i32_7 = arith.constant 2 : i32
    %16 = arith.cmpi ne, %1, %c2_i32_7 : i32
    %17 = arith.andi %15, %16 : i1
    %18 = arith.extui %17 : i1 to i32
    %c0_i32_8 = arith.constant 0 : i32
    %19 = arith.cmpi ne, %18, %c0_i32_8 : i32
    scf.if %19 {
      %c0_9 = arith.constant 0 : index
      %c0_10 = arith.constant 0 : index
      %c0_11 = arith.constant 0 : index
      %20 = vector.load %arg6[%c0_9, %c0_10, %c0_11] : memref<1x8x32xf32, #tpu.memory_space<vmem>>, vector<1x8x32xf32>
      %21 = vector.shape_cast %20 : vector<1x8x32xf32> to vector<8x32xf32>
      %22 = vector.shape_cast %8 : vector<8x32xf32> to vector<1x8x32xf32>
      tpu.vector_store %arg6[%c0_9, %c0_10, %c0_11], %22 {strides = array<i32>} : memref<1x8x32xf32, #tpu.memory_space<vmem>>, vector<1x8x32xf32>,
    } else {
    }
    return
  }
  func.func @transform_0(%arg0: i32, %arg1: i32, %arg2: memref<1xi32, #tpu.memory_space<smem>>) -> (i32, i32) {
    %c0_i32 = arith.constant 0 : i32
    %c0_i32_0 = arith.constant 0 : i32
    return %arg1, %c0_i32 : i32, i32
  }
  func.func @transform_1(%arg0: i32, %arg1: i32, %arg2: memref<1xi32, #tpu.memory_space<smem>>) -> (i32, i32) {
    %c0_i32 = arith.constant 0 : i32
    %c0_i32_0 = arith.constant 0 : i32
    %c0_i32_1 = arith.constant 0 : i32
    return %c0_i32, %c0_i32_0 : i32, i32
  }
  func.func @transform_2(%arg0: i32, %arg1: i32, %arg2: memref<1xi32, #tpu.memory_space<smem>>) -> (i32, i32) {
    %c0_i32 = arith.constant 0 : i32
    %c0_i32_0 = arith.constant 0 : i32
    %c0_i32_1 = arith.constant 0 : i32
    return %c0_i32, %c0_i32_0 : i32, i32
  }
  func.func @transform_3(%arg0: i32, %arg1: i32, %arg2: memref<1xi32, #tpu.memory_space<smem>>) -> (i32, i32, i32) {
    %c0_i32 = arith.constant 0 : i32
    %c0_i32_0 = arith.constant 0 : i32
    return %arg0, %arg1, %c0_i32 : i32, i32, i32
  }
}

</mosaic_0001>

<bundles_post_ra>
// kernel: _fused_forward.1
= control target key start
LH: loop header
LB: loop body
LE: loop exit
PB: predicated region body
PF: predicated region fallthrough
CT: control target
= control target key end

     0   :  { %10 = vsyncpa [#allocation5], 0  ;;  %s337_s0 = inlined_call_operand.<no memory space> [shape: s32[1], index: 0, kind: input, shape index: {}]   ;;  %s338_s1 = inlined_call_operand.hbm [shape: f32[8,32], index: 1, kind: input, shape index: {}]   ;;  %s339_s2 = inlined_call_operand.hbm [shape: bf16[32,32], index: 2, kind: input, shape index: {}]   ;;  %s340_s3 = inlined_call_operand.vmem [shape: f32[1,32], index: 3, kind: input, shape index: {}]   ;;  %s341_s4 = inlined_call_operand.hbm [shape: f32[1,8,32], index: 4, kind: output, shape index: {}]  }
   0x1   :  { %11 = vsyncpa [#allocation8], 0 }
   0x2   :  { %12 = vsyncpa [#allocation6], 0  ;;  %s249_s15 = smov [#allocation4]   ;;  %s250_s17 = smov [#allocation7]  }
   0x3   :  { %s19_s16 = sshll.u32 %s249_s15, 4  ;;  %s28_s18 = sshll.u32 %s250_s17, 4  ;;  %s20_s16 = int_to_ptr.vmem [resolvable:$true] %s19_s16  ;;  %s281_s18 = int_to_ptr.vmem [resolvable:$true] %s28_s18 }
   0x4   :  { %s177_s21 = scalar_lea.hbm %s338_s1, 128 }
   0x5   :  { %p178_p0 = scmp.ne.s32.totalorder %s338_s1, %s177_s21  ;;  %p181_p1 = scmp.lt.u32.totalorder %s177_s21, %s338_s1 }
   0x7   :  { %p183_p2 = pnand %p181_p1, %p178_p0 }
   0x9   :  { %186 = shalt.err (!%p183_p2)
}
   0xa   :  { %s187_s26 = scalar_lea.vmem %s20_s16, 128  ;;  %p192_p4 = scmp.lt.s32.totalorder %s20_s16, %s20_s16 }
   0xb   :  { %p188_p3 = scmp.ne.s32.totalorder %s20_s16, %s187_s26  ;;  %p193_p5 = scmp.lt.s32.totalorder %s187_s26, %s187_s26 }
   0xd   :  { %p194_p6 = por %p193_p5, %p192_p4 }
   0xf   :  { %p195_p7 = pnand %p194_p6, %p188_p3 }
  0x11   :  { %198 = shalt.err (!%p195_p7)
}
  0x12   :  { %22 = dma.hbm_to_vmem [thread:$0]  %s338_s1, 128, %s20_s16, [#allocation5]  }
  0x13   :  { %s199_s5 = scalar_lea.hbm %s339_s2, 256 }
  0x14   :  { %p200_p8 = scmp.ne.s32.totalorder %s339_s2, %s199_s5  ;;  %p203_p9 = scmp.lt.u32.totalorder %s199_s5, %s339_s2 }
  0x16   :  { %p205_p10 = pnand %p203_p9, %p200_p8 }
  0x18   :  { %208 = shalt.err (!%p205_p10)
}
  0x19   :  { %s209_s10 = scalar_lea.vmem %s281_s18, 256  ;;  %p214_p12 = scmp.lt.s32.totalorder %s281_s18, %s281_s18 }
  0x1a   :  { %p210_p11 = scmp.ne.s32.totalorder %s281_s18, %s209_s10  ;;  %p215_p13 = scmp.lt.s32.totalorder %s209_s10, %s209_s10 }
  0x1c   :  { %p216_p0 = por %p215_p13, %p214_p12 }
  0x1e   :  { %p217_p1 = pnand %p216_p0, %p210_p11 }
  0x20   :  { %220 = shalt.err (!%p217_p1)
}
  0x21   :  { %s251_s1 = smov 64   ;;  %s252_s11 = smov 4  }
  0x22   :  { %34 = dma.hbm_to_vmem [thread:$0]  %s339_s2, 256, %s281_s18, [#allocation8], %s251_s1, %s251_s1, %s252_s11  }
  0x23   :  { %243 = dma.done.wait [#allocation5], 128  }
  0x24   :  { %244 = vsyncadd [#allocation5], 4294967168 }
  0x25   :  { %245 = dma.done.wait [#allocation8], 256  }
  0x26   :  { %246 = vsyncadd [#allocation8], 4294967040  ;;  %v253_v0 = vmov 0.0   ;;  %vm254_vm0 = vmmov 0   ;;  %v173_v1 = vld [vmem:[#allocation7] sm:$0xff]   ;;  %v174_v2 = vld [vmem:[#allocation7 + $0x8] sm:$0xff]  }
  0x27   :  { %158 = vmatprep.subr.bf16.mxu0 %v253_v0  ;;  %162 = vmatprep.mubr.msk.bf16.mxu0 %vm254_vm0, %v253_v0  ;;  %v45_v3 = vld [vmem:[#allocation4] sm:$0xff]  ;;  %vm70_vm1 = vcmask 261120   ;;  %p153_p2 = scmp.ne.s32.totalorder %s337_s0, 1 }
  0x28   :  { %159 = vmatpush3.bf16.msra.mxu0 %v173_v1  ;;  %v46_v4 = vpack.c.bf16 %v45_v3, %v45_v3  ;;  %v149_v5 = vld [vmem:[%s340_s3] ss:$0 sm:$0xff] }
  0x29   :  { %160 = vmatprep.subr.bf16.mxu0 %v253_v0 }
  0x2c   :  { %161 = vmatpush3.bf16.msra.mxu0 %v174_v2 }
  0x2f   :  { %163 = vmatmul.mubr.msk.bf16.vlgmr.msra.gmra.mrb[0].mxu0 %vm70_vm1, %v46_v4 }
  0xff   :  { %117 = sbr.rel (%p153_p2) target bundleno = 264 (0x108), region = 25 }
 0x102   :  { %v108_v6 = vpop.f32.mrb[0].mxu0 }
 0x103   :  { %v109_v7 = vadd.f32 %v149_v5, %v108_v6  ;;  %v164_v8 = vpop.f32.mrb[1].mxu0 }
 0x104   :  { %v111_v9 = vpop.f32.mrb[2].mxu0 }
 0x105   :  { %v165_v10 = vpop.f32.mrb[3].mxu0  ;;  %v118_v11 = vmax.f32 (!%p153_p2), %v109_v7, 0.0 }
 0x107   :  { %119 = vst.msk [vmem:[#allocation9] sm:$0xff] %vm70_vm1, %v118_v11 }
 0x108 PF:  { %p154_p3 = scmp.ne.s32.totalorder %s337_s0, 2 }
 0x109   :  { %175 = vtanh.f32 (!%p154_p3), %v109_v7 }
 0x10a   :  { %123 = sbr.rel (%p154_p3) target bundleno = 277 (0x115), region = 29 }
 0x113   :  { %v176_v12 = vpop.eup %175 }
 0x114   :  { %125 = vst.msk [vmem:[#allocation9] sm:$0xff] %vm70_vm1, %v176_v12 }
 0x115 PF:  { %p128_p4 = pnand %p154_p3, %p153_p2 }
 0x116   :  { %132 = vst.msk [vmem:[#allocation9] sm:$0xff] (!%p128_p4), %vm70_vm1, %v109_v7 }
 0x117   :  { %131 = sbr.rel (%p128_p4) target bundleno = 286 (0x11e), region = 33 }
 0x11e PF:  { %s255_s3 = smov [#allocation9]  }
 0x11f   :  { %s139_s19 = sshll.u32 %s255_s3, 4  ;;  %s140_s19 = int_to_ptr.vmem [resolvable:$true] %s139_s19 }
 0x120   :  { %s221_s20 = scalar_lea.vmem %s140_s19, 128  ;;  %p226_p6 = scmp.lt.s32.totalorder %s140_s19, %s140_s19 }
 0x121   :  { %p222_p5 = scmp.ne.s32.totalorder %s140_s19, %s221_s20  ;;  %p227_p7 = scmp.lt.s32.totalorder %s221_s20, %s221_s20 }
 0x123   :  { %p228_p8 = por %p227_p7, %p226_p6 }
 0x125   :  { %p229_p9 = pnand %p228_p8, %p222_p5 }
 0x127   :  { %232 = shalt.err (!%p229_p9)
}
 0x128   :  { %s233_s22 = scalar_lea.hbm %s341_s4, 128 }
 0x129   :  { %p234_p10 = scmp.ne.s32.totalorder %s341_s4, %s233_s22  ;;  %p237_p11 = scmp.lt.u32.totalorder %s233_s22, %s341_s4 }
 0x12b   :  { %p239_p12 = pnand %p237_p11, %p234_p10 }
 0x12d   :  { %242 = shalt.err (!%p239_p12)
}
 0x12e   :  { %142 = dma.vmem_to_hbm [thread:$0]  %s140_s19, 128, %s341_s4, [#allocation6]  }
 0x12f   :  { %247 = dma.done.wait [#allocation6], 128  }
 0x130   :  { %248 = vsyncadd [#allocation6], 4294967168 }
 0x131   :  { %146 = vsyncpa [#allocation5], 1 }
 0x132   :  { %147 = vsyncpa [#allocation8], 1 }
 0x133   :  { %148 = vsyncpa [#allocation6], 1 }

</bundles_post_ra>
